<compile_context>
chip_gen: v7x
topology: tpu7x:2x2x1
jax: 0.10.0
libtpu: 0.0.40
codegen_flags: <defaults>
</compile_context>

<pallas_src>
import functools
from dataclasses import dataclass
from typing import Optional

import jax
import jax.numpy as jnp
from jax.experimental import pallas as pl
from jax.experimental.pallas import tpu as pltpu

# SATVideoDiffusionEngine.scale_factor for CogVideoX-2B (deterministic constant).
SCALE_FACTOR = 1.15258426


# ----------------------------------------------------------------------------
# Kernel 1: fused layout change + pre-process
#   out[b, t, c, h, w] = clip(in[b, c, t, h, w] * 2 - 1, -1, 1)
# The rearrange is expressed purely in the BlockSpec index_maps: for a fixed
# (b, t) the input region x[b, :, t] and the output region out[b, t] hold the
# same (C, H, W) elements in the same order, so the kernel body is a dense
# elementwise affine+clamp and the DMA performs the transpose for free.
# ----------------------------------------------------------------------------
def _pre_process_kernel(x_ref, o_ref):
    y = x_ref[...].astype(jnp.float32) * 2.0 - 1.0
    y = jnp.clip(y, -1.0, 1.0)
    o_ref[...] = y.astype(o_ref.dtype)


def pre_process_cog_video(mp4):
    """(B, C, T, H, W) -> (B, T, C, H, W) with values clip(2x - 1, -1, 1)."""
    B, C, T, H, W = mp4.shape
    nbytes = mp4.size * mp4.dtype.itemsize
    # One (C, H, W) frame per grid step; every step owns a distinct output
    # block so both grid axes are "parallel" (v7x megacore splits B*T blocks).
    # VMEM footprint: 2 (dbl buffer) * 2 (in+out) * C*H*W*4B  (~16.6 MiB at
    # 3x480x720 f32) — under the 32 MiB scoped default on every generation.
    return pl.pallas_call(
        _pre_process_kernel,
        out_shape=jax.ShapeDtypeStruct((B, T, C, H, W), mp4.dtype),
        grid=(B, T),
        in_specs=[pl.BlockSpec((None, C, None, H, W),
                               lambda b, t: (b, 0, t, 0, 0))],
        out_specs=pl.BlockSpec((None, None, C, H, W),
                               lambda b, t: (b, t, 0, 0, 0)),
        compiler_params=pltpu.CompilerParams(
            dimension_semantics=("parallel", "parallel")),
        cost_estimate=pl.CostEstimate(flops=2 * mp4.size, transcendentals=0,
                                      bytes_accessed=2 * nbytes),
    )(mp4)


# ----------------------------------------------------------------------------
# Kernel 2: decode_latent + _post_process_cog_video, fused.
#   out[b, n, t, h, w] = clip( sum_c  x[b, t, c, h, w] * w_eff[c, n] + b_eff[n],
#                              0, 1 )
# x stays in the sampler's native (B, T, C, h, w) layout; the 'b t c h w ->
# b c t h w' rearrange lives in the in/out index_maps.  Every multiply/add in
# the channel MAC acts on a dense (h, w) slab (x[c] is a major-dim select, no
# relayout); the c_in reduction is the accumulate chain; the 3 output channels
# are stacked along the major axis (no sublane concat) and stored once.
# Weights/bias are tiny and consumed as per-(c, n) scalar broadcasts from SMEM
# (51 scalar reads per frame, hidden under the HBM-bound DMA); an MXU-dot form
# would require flattening (h, w) into a lane axis, i.e. exactly the HBM
# reshape/transpose pass this kernel eliminates.
# ----------------------------------------------------------------------------
def _decode_project_kernel(x_ref, w_ref, b_ref, o_ref, *, c_in, c_out):
    x = x_ref[...].astype(jnp.float32)            # (c_in, h, w) dense block
    outs = []
    for n in range(c_out):                        # static unroll (c_out = 3)
        acc = x[0] * w_ref[0, n]
        for c in range(1, c_in):                  # static unroll (c_in = 16)
            acc = acc + x[c] * w_ref[c, n]
        acc = acc + b_ref[n]
        acc = jnp.clip(acc, 0.0, 1.0)             # fused _post_process clamp
        outs.append(acc)
    # Stack along the (major) channel axis: pure vreg placement, no relayout.
    o_ref[...] = jnp.stack(outs, axis=0).astype(o_ref.dtype)


def decode_latent_and_postprocess(samples_z, dec_w_eff, dec_b_eff):
    """samples_z: (B, T, C, h, w) sampler output.  Returns (B, 3, t_dec, h, w).

    Folds into one pallas_call: the b t c h w -> b c t h w rearrange,
    1/scale_factor, the synthetic decode projection, (y+1)/2 and the [0,1]
    clamp, and the reference per-window loop + torch.cat (grid over frames).
    """
    B, T, C, h, w = samples_z.shape
    loop_num = (T - 1) // 2
    # Frames covered by the reference window loop (3 + 2*(loop_num-1)); for even
    # T this drops the final frame, exactly like the reference windows do.
    t_dec = 2 * loop_num + 1
    n_out = dec_w_eff.shape[1]
    # TODO(synk): the real CogVideoX 3D causal VAE decoder (windowed,
    # checkpointed conv stack with 4x temporal / 8x spatial upsampling) is not
    # reconstructable from the provided code; a per-pixel channel projection
    # stands in for first_stage_model.decode.
    in_bytes = B * t_dec * C * h * w * samples_z.dtype.itemsize
    out_bytes = B * n_out * t_dec * h * w * 4
    return pl.pallas_call(
        functools.partial(_decode_project_kernel, c_in=C, c_out=n_out),
        out_shape=jax.ShapeDtypeStruct((B, n_out, t_dec, h, w), jnp.float32),
        grid=(B, t_dec),          # frames beyond t_dec are simply never read
        in_specs=[
            pl.BlockSpec((None, None, C, h, w), lambda b, t: (b, t, 0, 0, 0)),
            pl.BlockSpec(memory_space=pltpu.MemorySpace.SMEM),   # w_eff (C, 3)
            pl.BlockSpec(memory_space=pltpu.MemorySpace.SMEM),   # b_eff (3,)
        ],
        out_specs=pl.BlockSpec((None, n_out, None, h, w),
                               lambda b, t: (b, 0, t, 0, 0)),
        compiler_params=pltpu.CompilerParams(
            dimension_semantics=("parallel", "parallel")),
        cost_estimate=pl.CostEstimate(
            flops=2 * B * t_dec * C * n_out * h * w,
            transcendentals=0,
            bytes_accessed=in_bytes + out_bytes),
    )(samples_z, dec_w_eff, dec_b_eff)


# ----------------------------------------------------------------------------
# CogModelInferWrapper.forward equivalent.
# ----------------------------------------------------------------------------
@dataclass
class VideoTask:
    save_file_name: str
    prompt: str
    seed: int
    fps: int = 8
    mp4: Optional[jnp.ndarray] = None
    semantic_token: Optional[jnp.ndarray] = None
    result: Optional[jnp.ndarray] = None


class CogModelInferWrapperPallas:
    def __init__(self, latent_frames=5, latent_channels=16, latent_hw=(4, 4)):
        self.T = latent_frames            # args.sampling_num_frames
        self.C = latent_channels          # args.latent_channels
        self.h, self.w = latent_hw        # image_size // F (F = 8)
        # Deterministic synthetic decoder parameters (checkpoint not loadable).
        kw, kb = jax.random.split(jax.random.PRNGKey(42))
        self.dec_w = jax.random.normal(kw, (self.C, 3), jnp.float32) * 0.1
        self.dec_b = jax.random.normal(kb, (3,), jnp.float32) * 0.01
        # Fold 1/scale_factor and the (y+1)/2 post-process affine into the
        # projection parameters:  clip(((x/s) @ w + b + 1)/2, 0, 1)
        #                       = clip(x @ (w * 0.5/s) + (0.5*b + 0.5), 0, 1)
        self.dec_w_eff = (self.dec_w * (0.5 / SCALE_FACTOR)).astype(jnp.float32)
        self.dec_b_eff = (self.dec_b * 0.5 + 0.5).astype(jnp.float32)

    def forward(self, task: VideoTask) -> VideoTask:
        mp4 = task.mp4
        if mp4 is not None:
            # 'b c t h w -> b t c h w' + _pre_process_cog_video, one fused pass.
            mp4 = pre_process_cog_video(mp4)

        if task.semantic_token is not None:
            # '... -> 1 1 (...)'
            _ = task.semantic_token.reshape(1, 1, -1)

        # TODO(synk): text conditioner (T5 embedder) + the SAT diffusion sampler
        # denoising loop have no clean Pallas equivalent here; samples_z stands
        # in as the seeded noise the sampler would be initialised from, in the
        # sampler's native (b t c h w) layout.
        key = jax.random.PRNGKey(task.seed)
        samples_z = jax.random.normal(
            key, (1, self.T, self.C, self.h, self.w), jnp.float32)

        # decode_latent(rearrange(samples_z, 'b t c h w -> b c t h w')) followed
        # by _post_process_cog_video, fused into one Pallas kernel (the rearrange
        # lives in the BlockSpec index_maps).
        video = decode_latent_and_postprocess(samples_z, self.dec_w_eff,
                                              self.dec_b_eff)

        assert video.shape[0] == 1, f"video.shape[0] != 1, {video.shape[0]}"
        task.result = video[0]
        return task


if __name__ == "__main__":
    key = jax.random.PRNGKey(0)
    k_mp4, k_tok = jax.random.split(key)

    # Small conditioning video, PyTorch layout (B, C, T, H, W), values in [0, 1].
    mp4 = jax.random.uniform(k_mp4, (1, 3, 4, 16, 16), jnp.float32)
    semantic_token = jax.random.randint(k_tok, (2, 2, 4), 0, 1024)

    task = VideoTask(
        save_file_name="out.mp4",
        prompt="a cat playing piano",
        seed=0,
        mp4=mp4,
        semantic_token=semantic_token,
    )

    model = CogModelInferWrapperPallas(latent_frames=5, latent_channels=16,
                                       latent_hw=(4, 4))
    task = model.forward(task)
    result = jax.block_until_ready(task.result)

    # --- correctness checks against pure-JAX references ------------------
    # Pre-process (transpose + affine + clamp) reference.
    pre = jax.block_until_ready(pre_process_cog_video(mp4))
    pre_ref = jnp.clip(jnp.transpose(mp4, (0, 2, 1, 3, 4)) * 2.0 - 1.0,
                       -1.0, 1.0)
    assert pre.shape == (1, 4, 3, 16, 16), pre.shape
    assert jnp.allclose(pre, pre_ref, atol=1e-6), "pre-process mismatch"

    # Decode + post-process reference (same seeded latent as forward()).
    z = jax.random.normal(jax.random.PRNGKey(0), (1, 5, 16, 4, 4), jnp.float32)
    lat = jnp.transpose(z, (0, 2, 1, 3, 4)) * (1.0 / SCALE_FACTOR)
    recon = (jnp.einsum("bcthw,cn->bnthw", lat, model.dec_w)
             + model.dec_b[None, :, None, None, None])
    ref_vid = jnp.clip((recon + 1.0) * 0.5, 0.0, 1.0)
    assert result.shape == (3, 5, 4, 4), result.shape
    assert float(result.min()) >= 0.0 and float(result.max()) <= 1.0
    assert jnp.allclose(result, ref_vid[0], atol=1e-5, rtol=1e-5), \
        "decode/post-process mismatch"

    print("KERNEL_OK")
</pallas_src>

<mosaic_0001>
module attributes {stable_mosaic.version = 11 : i64} {
  func.func @_pre_process_kernel(%arg0: i32, %arg1: i32, %arg2: memref<1x3x1x16x16xf32, #tpu.memory_space<vmem>>, %arg3: memref<1x1x3x16x16xf32, #tpu.memory_space<vmem>>) attributes {dimension_semantics = [#tpu.dimension_semantics<parallel>, #tpu.dimension_semantics<parallel>], iteration_bounds = array<i64: 1, 4>, scalar_prefetch = 0 : i64, scratch_operands = 0 : i64, tpu.core_type = #tpu.core_type<tc>, window_params = [{transform_indices = @transform_0, window_bounds = array<i64: 1, 3, 1, 16, 16>}, {transform_indices = @transform_1, window_bounds = array<i64: 1, 1, 3, 16, 16>}]} {
    %c0 = arith.constant 0 : index
    %c0_0 = arith.constant 0 : index
    %c0_1 = arith.constant 0 : index
    %c0_2 = arith.constant 0 : index
    %c0_3 = arith.constant 0 : index
    %0 = vector.load %arg2[%c0, %c0_0, %c0_1, %c0_2, %c0_3] : memref<1x3x1x16x16xf32, #tpu.memory_space<vmem>>, vector<1x3x1x16x16xf32>
    %1 = vector.shape_cast %0 : vector<1x3x1x16x16xf32> to vector<3x16x16xf32>
    %cst = arith.constant 2.000000e+00 : f32
    %2 = vector.broadcast %cst : f32 to vector<3x16x16xf32>
    %3 = arith.mulf %1, %2 : vector<3x16x16xf32>
    %cst_4 = arith.constant 1.000000e+00 : f32
    %4 = vector.broadcast %cst_4 : f32 to vector<3x16x16xf32>
    %5 = arith.subf %3, %4 : vector<3x16x16xf32>
    %cst_5 = arith.constant -1.000000e+00 : f32
    %cst_6 = arith.constant 1.000000e+00 : f32
    %6 = vector.broadcast %cst_5 : f32 to vector<3x16x16xf32>
    %7 = arith.maximumf %6, %5 : vector<3x16x16xf32>
    %8 = vector.broadcast %cst_6 : f32 to vector<3x16x16xf32>
    %9 = arith.minimumf %8, %7 : vector<3x16x16xf32>
    %c0_7 = arith.constant 0 : index
    %c0_8 = arith.constant 0 : index
    %c0_9 = arith.constant 0 : index
    %c0_10 = arith.constant 0 : index
    %c0_11 = arith.constant 0 : index
    %10 = vector.load %arg3[%c0_7, %c0_8, %c0_9, %c0_10, %c0_11] : memref<1x1x3x16x16xf32, #tpu.memory_space<vmem>>, vector<1x1x3x16x16xf32>
    %11 = vector.shape_cast %10 : vector<1x1x3x16x16xf32> to vector<3x16x16xf32>
    %12 = vector.shape_cast %9 : vector<3x16x16xf32> to vector<1x1x3x16x16xf32>
    tpu.vector_store %arg3[%c0_7, %c0_8, %c0_9, %c0_10, %c0_11], %12 {strides = array<i32>} : memref<1x1x3x16x16xf32, #tpu.memory_space<vmem>>, vector<1x1x3x16x16xf32>,
    return
  }
  func.func @transform_0(%arg0: i32, %arg1: i32) -> (i32, i32, i32, i32, i32) {
    %c0_i32 = arith.constant 0 : i32
    %c0_i32_0 = arith.constant 0 : i32
    %c0_i32_1 = arith.constant 0 : i32
    %c0_i32_2 = arith.constant 0 : i32
    return %arg0, %c0_i32, %arg1, %c0_i32_0, %c0_i32_1 : i32, i32, i32, i32, i32
  }
  func.func @transform_1(%arg0: i32, %arg1: i32) -> (i32, i32, i32, i32, i32) {
    %c0_i32 = arith.constant 0 : i32
    %c0_i32_0 = arith.constant 0 : i32
    %c0_i32_1 = arith.constant 0 : i32
    %c0_i32_2 = arith.constant 0 : i32
    return %arg0, %arg1, %c0_i32, %c0_i32_0, %c0_i32_1 : i32, i32, i32, i32, i32
  }
}

</mosaic_0001>

<bundles_post_ra>
// kernel: tpu_custom_call.1
= control target key start
LH: loop header
LB: loop body
LE: loop exit
PB: predicated region body
PF: predicated region fallthrough
CT: control target
= control target key end

     0   :  { %6 = vsyncpa [#allocation3], 0  ;;  %s676_s0 = inlined_call_operand.hbm [shape: f32[1,3,4,16,16], index: 0, kind: input, shape index: {}]   ;;  %s677_s1 = inlined_call_operand.hbm [shape: f32[1,4,3,16,16], index: 1, kind: output, shape index: {}]  }
   0x1   :  { %8 = vsyncpa [#allocation3 + $0x1], 0 }
   0x2   :  { %9 = vsyncpa [#allocation4], 0 }
   0x3   :  { %11 = vsyncpa [#allocation4 + $0x1], 0  ;;  %s521_s6 = smov 0   ;;  %s523_s7 = smov 0  }
   0x4   :  { %s525_s8 = smov 0   ;;  %s527_s9 = smov 0  }
   0x5   :  { %s529_s10 = smov 0   ;;  %s531_s11 = smov 0  }
   0x6 LB: > { %s318_s12 = sadd.s32 4294967295, %s500_s11   ;;  %s319_s13 = sadd.s32 4294967294, %s500_s11   ;;  %s500_s11 = sphi %s531_s11, %s17_s11   ;;  %s496_s10 = sphi %s529_s10, %s686_s10   ;;  %s492_s9 = sphi %s527_s9, %s685_s9   ;;  %s488_s8 = sphi %s525_s8, %s684_s8   ;;  %s484_s7 = sphi %s523_s7, %s683_s7   ;;  %s480_s6 = sphi %s521_s6, %s682_s6  }
   0x7   : > { %s26_s14 = sadd.s32 1, %s496_s10  ;;  %s38_s15 = sadd.s32 1, %s488_s8 }
   0x8   : > { %p27_p0 = scmp.ge.s32.totalorder %s26_s14, 4  ;;  %p45_p1 = scmp.ne.s32.totalorder %s488_s8, %s484_s7 }
   0x9   : > { %p46_p2 = scmp.eq.s32.totalorder %s500_s11, 0  ;;  %p51_p3 = scmp.ne.s32.totalorder %s484_s7, %s480_s6 }
   0xa   : > { %s688_s14 = smov (%p27_p0, %s26_s14), 0  ;;  %p52_p5 = scmp.eq.s32.totalorder %s318_s12, 0 }
   0xb   : > { %p562_p4 = por %p46_p2, %p45_p1  ;;  %s34_s17 = ssub.s32 %s496_s10, %s688_s14 }
   0xc   : > { %p77_p6 = scmp.eq.s32.totalorder %s318_s12, 3  ;;  %p36_p7 = scmp.eq.s32.totalorder %s34_s17, 0 }
   0xd   : > { %p568_p8 = por %p52_p5, %p51_p3  ;;  %p83_p10 = scmp.eq.s32.totalorder %s319_s13, 3 }
   0xe   : > { %p572_p9 = por %p77_p6, %p45_p1  ;;  %p321_p12 = scmp.ge.s32.totalorder %s500_s11, 4 }
   0xf   : > { %s577_s20 = scalar_select %p36_p7, %s488_s8, %s38_s15  }
  0x10   : > { %p579_p11 = por %p83_p10, %p51_p3  ;;  %99 = sbr.rel (%p321_p12) target bundleno = 37 (0x25), region = 16 }
  0x17   : > { %s103_s22 = sand.u32 1, %s488_s8   ;;  %s342_s24 = sshll.u32 %s496_s10, 8 }
  0x18   : > { %s343_s23 = smul.u32 48, %s103_s22  ;;  %s502_s25 = smov 1024  }
  0x19   : > { %347 = sst [smem:[#allocation7]] (%p562_p4), %s502_s25  ;;  %s115_s29 = scalar_lea.hbm %s676_s0, %s342_s24 }
  0x1a   : > { %s346_s26 = scalar_select %p562_p4, [#allocation0], [#allocation8] }
  0x1b   : > { %s107_s2 = scalar_lea.vmem [#allocation2], %s343_s23  ;;  %s503_s4 = smov 256  }
  0x1c   : > { %s120_s30 = sld [smem:[%s346_s26]]   ;;  %s128_s3 = sshll.u32 %s107_s2, 4  ;;  %s129_s3 = int_to_ptr.vmem [resolvable:$true] %s128_s3 }
  0x1d   : > { %348 = sst [smem:[#allocation7 + $0x1]] (%p562_p4), %s503_s4  ;;  %s504_s5 = smov 2  }
  0x1e   : > { %349 = sst [smem:[#allocation7 + $0x2]] (%p562_p4), %s504_s5  ;;  %s505_s12 = smov 128  }
  0x1f   : > { %350 = sst [smem:[#allocation7 + $0x3]] (%p562_p4), %s505_s12  ;;  %s506_s13 = smov 8  }
  0x20   : > { %351 = sst [smem:[#allocation7 + $0x4]] (%p562_p4), %s505_s12  ;;  %s104_s23 = scalar_lea.sflag [#allocation3], %s103_s22 }
  0x21   : > { %352 = sst [smem:[#allocation7 + $0x5]] (%p562_p4), %s506_s13  ;;  %s507_s24 = smov [#allocation6]  }
  0x22   : > { %s324_s15 = sshll.u32 %s120_s30, 26 }
  0x23   : > { %s325_s17 = sadd.s32 134217728, %s324_s15 }
  0x24   : > { %353 = dma.general (%p562_p4), %s115_s29, 768, %s129_s3, %s104_s23, %s507_s24, [#allocation7], %s325_s17, 0  }
  0x25 PF: > { %p326_p13 = scmp.ge.s32.totalorder %s500_s11, 1  ;;  %p149_p0 = scmp.lt.s32.totalorder %s500_s11, 5 }
  0x27   : > { %p150_p1 = pnand %p326_p13, %p149_p0 }
  0x28   : > { %s608_s25 = sand.u32 (!%p150_p1), 1, %s484_s7  }
  0x29   : > { %153 = sbr.rel (%p150_p1) target bundleno = 75 (0x4b), region = 24  ;;  %s156_s27 = scalar_lea.sflag (!%p150_p1), [#allocation3], %s608_s25 }
  0x2a   : > { %s344_s26 = smul.u32 (!%p150_p1), 48, %s608_s25 }
  0x2c   : > { %s159_s28 = scalar_lea.vmem (!%p150_p1), [#allocation2], %s344_s26 }
  0x30   : > { %471 = dma.done.wait (%p568_p8), %s156_s27, 768  }
  0x31   : > { %473 = vsyncadd (%p568_p8), %s156_s27, 4294966528  ;;  %v178_v0 = vld [vmem:[%s159_s28] sm:$0xff]  ;;  %v179_v1 = vld [vmem:[%s159_s28 + $0x8] sm:$0xff]  ;;  %s177_s16 = scalar_lea.vmem [#allocation5], %s344_s26  ;;  %s345_s29 = smul.u32 768, %s492_s9  ;;  %vm208_vm0 = vcmask 130048  }
  0x32   : > { %v180_v2 = vld [vmem:[%s159_s28 + $0x10] sm:$0xff]  ;;  %v184_v3 = vmul.f32 2.0, %v178_v0  ;;  %v185_v4 = vmul.f32 2.0, %v179_v1  ;;  %v181_v6 = vld [vmem:[%s159_s28 + $0x18] sm:$0xff]  ;;  %v182_v7 = vld [vmem:[%s159_s28 + $0x20] sm:$0xff]  ;;  %s231_s22 = sshll.u32 %s177_s16, 4  ;;  %s617_s22 = int_to_ptr.vmem [resolvable:$true] %s231_s22 }
  0x33   : > { %v186_v5 = vmul.f32 2.0, %v180_v2  ;;  %v183_v8 = vld [vmem:[%s159_s28 + $0x28] sm:$0xff]  ;;  %v187_v9 = vmul.f32 2.0, %v181_v6  ;;  %v188_v10 = vmul.f32 2.0, %v182_v7  ;;  %s622_s30 = scalar_lea.hbm %s677_s1, %s345_s29  ;;  %s216_s2 = scalar_lea.sflag [#allocation4], %s608_s25 }
  0x34   : > { %v189_v11 = vmul.f32 2.0, %v183_v8  ;;  %v327_v12 = vadd.f32 -1.0, %v184_v3  ;;  %v328_v13 = vadd.f32 -1.0, %v185_v4  ;;  %s418_s3 = scalar_lea.vmem %s617_s22, 768  ;;  %s508_s4 = smov [#allocation5]  }
  0x35   : > { %v329_v14 = vadd.f32 -1.0, %v186_v5  ;;  %v330_v15 = vadd.f32 -1.0, %v187_v9  ;;  %v331_v16 = vadd.f32 -1.0, %v188_v10  ;;  %p419_p2 = scmp.ne.s32.totalorder %s617_s22, %s418_s3  ;;  %s422_s5 = sshll.u32 %s508_s4, 4  ;;  %s423_s5 = int_to_ptr.vmem [resolvable:$false] %s422_s5 }
  0x36   : > { %v332_v17 = vadd.f32 -1.0, %v189_v11  ;;  %v333_v18 = vclamps-f32 %v327_v12, 1.0  ;;  %v334_v19 = vclamps-f32 %v328_v13, 1.0  ;;  %s424_s12 = scalar_lea.vmem %s423_s5, 1536  ;;  %p425_p5 = scmp.lt.s32.totalorder %s617_s22, %s423_s5 }
  0x37   : > { %v335_v20 = vclamps-f32 %v329_v14, 1.0  ;;  %v336_v21 = vclamps-f32 %v330_v15, 1.0  ;;  %v337_v22 = vclamps-f32 %v331_v16, 1.0  ;;  %p420_p3 = pnand %p419_p2, %p572_p9  ;;  %p426_p6 = scmp.lt.s32.totalorder %s424_s12, %s418_s3 }
  0x38   : > { %v338_v23 = vclamps-f32 %v332_v17, 1.0  ;;  %209 = vst.msk [vmem:[%s177_s16] sm:$0xff] %vm208_vm0, %v333_v18  ;;  %210 = vst.msk [vmem:[%s177_s16 + $0x8] sm:$0xff] %vm208_vm0, %v334_v19 }
  0x39   : > { %211 = vst.msk [vmem:[%s177_s16 + $0x10] sm:$0xff] %vm208_vm0, %v335_v20  ;;  %212 = vst.msk [vmem:[%s177_s16 + $0x18] sm:$0xff] %vm208_vm0, %v336_v21  ;;  %p421_p4 = pneg %p420_p3  ;;  %p427_p7 = por %p426_p6, %p425_p5 }
  0x3a   : > { %213 = vst.msk [vmem:[%s177_s16 + $0x20] sm:$0xff] %vm208_vm0, %v337_v22  ;;  %214 = vst.msk [vmem:[%s177_s16 + $0x28] sm:$0xff] %vm208_vm0, %v338_v23 }
  0x3b   : > { %p428_p8 = pnand %p427_p7, %p421_p4 }
  0x3d   : > { %431 = shalt.err (!%p428_p8)
}
  0x3e   : > { %s432_s13 = scalar_lea.hbm %s622_s30, 768  ;;  %s436_s23 = scalar_lea.hbm %s677_s1, 3072 }
  0x3f   : > { %p433_p10 = scmp.ne.s32.totalorder %s622_s30, %s432_s13  ;;  %p437_p0 = scmp.lt.u32.totalorder %s622_s30, %s677_s1 }
  0x40   : > { %p438_p1 = scmp.lt.u32.totalorder %s436_s23, %s432_s13  ;;  %p440_p3 = scmp.lt.u32.totalorder %s432_s13, %s622_s30 }
  0x41   : > { %p434_p12 = pnand %p433_p10, %p572_p9 }
  0x42   : > { %p439_p2 = por %p438_p1, %p437_p0 }
  0x43   : > { %p435_p13 = pneg %p434_p12 }
  0x44   : > { %p441_p4 = por %p440_p3, %p439_p2 }
  0x46   : > { %p442_p5 = pnand %p441_p4, %p435_p13 }
  0x48   : > { %445 = shalt.err (!%p442_p5)
}
  0x49   : > { %s509_s27 = smov 128   ;;  %s510_s28 = smov 8  }
  0x4a   : > { %355 = dma.vmem_to_hbm [thread:$0]  (%p572_p9), %s617_s22, 768, %s622_s30, %s216_s2, %s509_s27, %s509_s27, %s510_s28  }
  0x4b PF: > { %p361_p6 = scmp.ge.s32.totalorder %s500_s11, 2  ;;  %s246_s16 = sand.u32 1, %s480_s6  }
  0x4c   : > { %s247_s29 = scalar_lea.sflag [#allocation4], %s246_s16 }
  0x4d   : > { %p358_p7 = pnand %p361_p6, %p579_p11 }
  0x4f   : > { %475 = dma.done.wait (!%p358_p7), %s247_s29, 768  }
  0x50   : > { %477 = vsyncadd (!%p358_p7), %s247_s29, 4294966528  ;;  %s17_s11 = sadd.s32 1, %s500_s11   ;;  %s682_s6 = smov %s484_s7 }
  0x51   : > { %p14_p8 = scmp.ge.s32.totalorder %s17_s11, 6   ;;  %s683_s7 = smov %s488_s8 }
  0x52   : > { %s684_s8 = smov %s577_s20  ;;  %s685_s9 = smov %s496_s10 }
  0x53   : > { %s686_s10 = smov %s688_s14  ;;  %16 = sbr.rel (!%p14_p8) target bundleno = 6 (0x6), region = 74 }
  0x5a   :  { %252 = vsyncpa [#allocation3], 1 }
  0x5b   :  { %254 = vsyncpa [#allocation3 + $0x1], 1 }
  0x5c   :  { %255 = vsyncpa [#allocation4], 1 }
  0x5d   :  { %257 = vsyncpa [#allocation4 + $0x1], 1 }

</bundles_post_ra>
